<compile_context>
chip_gen: v7x
topology: tpu7x:2x2x1
jax: 0.10.0
libtpu: 0.0.40
codegen_flags: <defaults>
</compile_context>

<pallas_src>
import functools

import jax
import jax.numpy as jnp
import numpy as np
from jax.experimental import pallas as pl
from jax.experimental.pallas import tpu as pltpu


def _round_up(x, m):
    return (x + m - 1) // m * m


# ----------------------------------------------------------------------------
# Pallas kernel: classifier linear + masked token-level cross-entropy loss
# ----------------------------------------------------------------------------
def _ner_head_kernel(x_ref, w_ref, b_ref, lab_ref,         # inputs
                     emis_ref, psum_ref, pcnt_ref):        # outputs
    # ---- classifier: emissions = x @ W^T + b  (dropout is eval-mode identity)
    # x/w arrive as bf16 (halves HBM->VMEM traffic); MXU accumulates in f32.
    logits = jnp.dot(x_ref[...], w_ref[...],
                     preferred_element_type=jnp.float32)     # (tm, L) f32
    logits = logits + b_ref[...].astype(jnp.float32)
    # NOTE: L=9 < 128 lanes -> masked vst on this store. A transposed (L, tm)
    # lane-dense layout is only worth it if the store path binds; it does not
    # at these sizes.
    emis_ref[...] = logits.astype(emis_ref.dtype)

    # ---- masked cross-entropy with ignore_index = -100
    # (attention mask already folded into labels by the wrapper)
    lab = lab_ref[...]                                       # (tm, 1) int32
    valid = lab != -100                                      # (tm, 1) bool

    m = jnp.max(logits, axis=-1, keepdims=True)
    lse = m + jnp.log(jnp.sum(jnp.exp(logits - m), axis=-1, keepdims=True))
    cls_iota = jax.lax.broadcasted_iota(jnp.int32, logits.shape, 1)
    tgt = jnp.sum(jnp.where(cls_iota == lab, logits, 0.0),
                  axis=-1, keepdims=True)
    per_tok = jnp.where(valid, lse - tgt, 0.0)               # (tm, 1) f32

    # Per-block partial sums written to full (8,128) blocks (lane-dense,
    # unmasked stores) so the grid axis can be "parallel"; final reduce in JAX.
    psum_ref[...] = jnp.full(psum_ref.shape, jnp.sum(per_tok), jnp.float32)
    pcnt_ref[...] = jnp.full(pcnt_ref.shape,
                             jnp.sum(valid.astype(jnp.float32)), jnp.float32)


def ner_head(sequence_output, w_t, bias, attention_mask, labels, *, tm=1024):
    """sequence_output: [B,S,H]  w_t: [H,L]  bias: [L]  mask/labels: [B,S]."""
    B, S, H = sequence_output.shape
    L = w_t.shape[1]
    N = B * S

    # Fold attention mask into labels once, in the wrapper (ignore_index=-100).
    active_lab = jnp.where(attention_mask.reshape(-1) == 1,
                           labels.reshape(-1).astype(jnp.int32),
                           jnp.int32(-100))

    # Row tile: as large as possible (per-grid-step overhead ~0.35us), capped
    # by N. At BERT sizes (H=768, bf16) double-buffered x is ~3 MiB at tm=1024,
    # comfortably inside v7x's 64 MiB VMEM.
    tm = min(tm, _round_up(N, 16))
    N_pad = _round_up(N, tm)
    G = N_pad // tm

    x = sequence_output.reshape(N, H).astype(jnp.bfloat16)
    if N_pad != N:
        # Padded rows carry label -100 -> excluded from the loss; their
        # emissions rows are sliced off below.
        x = jnp.pad(x, ((0, N_pad - N), (0, 0)))
        active_lab = jnp.pad(active_lab, (0, N_pad - N), constant_values=-100)
    lab2d = active_lab.reshape(N_pad, 1)
    w_bf = w_t.astype(jnp.bfloat16)
    b2d = bias.reshape(1, L).astype(jnp.float32)

    cost = pl.CostEstimate(
        flops=2 * N_pad * H * L,
        transcendentals=N_pad * L,
        bytes_accessed=(N_pad * H * 2        # x (bf16)
                        + H * L * 2 + L * 4  # weight + bias
                        + N_pad * 4          # labels
                        + N_pad * L * 4      # emissions
                        + 2 * G * 8 * 128 * 4))

    emissions, psum, pcnt = pl.pallas_call(
        _ner_head_kernel,
        out_shape=(
            jax.ShapeDtypeStruct((N_pad, L), jnp.float32),
            jax.ShapeDtypeStruct((G, 8, 128), jnp.float32),
            jax.ShapeDtypeStruct((G, 8, 128), jnp.float32),
        ),
        grid=(G,),
        in_specs=[
            pl.BlockSpec((tm, H), lambda i: (i, 0)),        # x tile (bf16)
            pl.BlockSpec((H, L), lambda i: (0, 0)),         # full weight (bf16)
            pl.BlockSpec((1, L), lambda i: (0, 0)),         # bias
            pl.BlockSpec((tm, 1), lambda i: (i, 0)),        # masked labels tile
        ],
        out_specs=[
            pl.BlockSpec((tm, L), lambda i: (i, 0)),        # emissions tile
            pl.BlockSpec((1, 8, 128), lambda i: (i, 0, 0)),  # partial loss sum
            pl.BlockSpec((1, 8, 128), lambda i: (i, 0, 0)),  # partial count
        ],
        compiler_params=pltpu.CompilerParams(
            dimension_semantics=("parallel",),   # blocks are fully independent
            vmem_limit_bytes=48 * 1024 * 1024),
        cost_estimate=cost,
    )(x, w_bf, b2d, lab2d)

    # Final reduction of the tiny per-block partials in plain JAX.
    loss_sum = jnp.sum(psum[:, 0, 0])
    valid_cnt = jnp.sum(pcnt[:, 0, 0])
    # NOTE: valid_cnt == 0 -> NaN, matching torch.nn.CrossEntropyLoss('mean').
    loss = loss_sum / valid_cnt
    return loss, emissions[:N].reshape(B, S, L)


# ----------------------------------------------------------------------------
# Module-equivalent wrapper
# ----------------------------------------------------------------------------
class NerLinearModelPallas:
    def __init__(self, key, vocab_size=100, embedding_size=32, num_labels=9):
        # TODO(synk): the pretrained BertModel backbone has no self-contained
        # Pallas equivalent; a deterministic embedding table stands in for it.
        self.num_labels = num_labels
        self.ignore_index = -100
        k_emb, k_w, k_b = jax.random.split(key, 3)
        self.embed_table = jax.random.normal(
            k_emb, (vocab_size, embedding_size), jnp.float32) * 0.02
        # classifier: nn.Linear(embedding_size, num_labels, bias=True)
        self.w_t = jax.random.normal(
            k_w, (embedding_size, num_labels), jnp.float32) * 0.02
        self.bias = jax.random.normal(k_b, (num_labels,), jnp.float32) * 0.02

    @functools.partial(jax.jit, static_argnums=0)
    def forward(self, input_ids, attention_mask, labels):
        # "transformer" stand-in (plain-JAX glue): embedding lookup -> [B,S,H]
        sequence_output = self.embed_table[input_ids]
        # nn.Dropout(0.1) in eval mode is identity.
        loss, emissions = ner_head(
            sequence_output, self.w_t, self.bias, attention_mask, labels)
        return loss, emissions


# ----------------------------------------------------------------------------
# Pure-JAX reference for correctness check (same bf16 storage of x / W)
# ----------------------------------------------------------------------------
def _reference(model, input_ids, attention_mask, labels):
    seq = model.embed_table[input_ids]
    x = seq.astype(jnp.bfloat16).astype(jnp.float32)
    w = model.w_t.astype(jnp.bfloat16).astype(jnp.float32)
    emis = x @ w + model.bias
    B, S, L = emis.shape
    logits = emis.reshape(-1, L)
    lab = jnp.where(attention_mask.reshape(-1) == 1, labels.reshape(-1), -100)
    valid = lab != -100
    lse = jax.scipy.special.logsumexp(logits, axis=-1)
    tgt = jnp.take_along_axis(
        logits, jnp.clip(lab, 0, L - 1)[:, None], axis=-1)[:, 0]
    per_tok = jnp.where(valid, lse - tgt, 0.0)
    loss = per_tok.sum() / valid.sum()
    return loss, emis


if __name__ == "__main__":
    key = jax.random.PRNGKey(0)
    k_model, k_ids, k_mask, k_lab = jax.random.split(key, 4)

    B, S, H, L, V = 2, 8, 32, 9, 100
    model = NerLinearModelPallas(k_model, vocab_size=V,
                                 embedding_size=H, num_labels=L)

    input_ids = jax.random.randint(k_ids, (B, S), 0, V, jnp.int32)
    attention_mask = (jax.random.uniform(k_mask, (B, S)) > 0.25).astype(jnp.int32)
    labels = jax.random.randint(k_lab, (B, S), 0, L, jnp.int32)

    loss, emissions = model.forward(input_ids, attention_mask, labels)
    jax.block_until_ready((loss, emissions))

    ref_loss, ref_emis = _reference(model, input_ids, attention_mask, labels)
    np.testing.assert_allclose(np.asarray(emissions), np.asarray(ref_emis),
                               rtol=1e-5, atol=1e-5)
    np.testing.assert_allclose(np.asarray(loss), np.asarray(ref_loss),
                               rtol=1e-5, atol=1e-5)

    print("KERNEL_OK")
</pallas_src>

<mosaic_0001>
module attributes {stable_mosaic.version = 11 : i64} {
  func.func @_ner_head_kernel(%arg0: i32, %arg1: memref<16x32xbf16, #tpu.memory_space<vmem>>, %arg2: memref<32x9xbf16, #tpu.memory_space<vmem>>, %arg3: memref<1x9xf32, #tpu.memory_space<vmem>>, %arg4: memref<16x1xi32, #tpu.memory_space<vmem>>, %arg5: memref<16x9xf32, #tpu.memory_space<vmem>>, %arg6: memref<1x8x128xf32, #tpu.memory_space<vmem>>, %arg7: memref<1x8x128xf32, #tpu.memory_space<vmem>>) attributes {dimension_semantics = [#tpu.dimension_semantics<parallel>], iteration_bounds = array<i64: 1>, scalar_prefetch = 0 : i64, scratch_operands = 0 : i64, tpu.core_type = #tpu.core_type<tc>, window_params = [{transform_indices = @transform_0, window_bounds = array<i64: 16, 32>}, {pipeline_mode = #tpu.pipeline_mode<synchronous>, transform_indices = @transform_1, window_bounds = array<i64: 32, 9>}, {pipeline_mode = #tpu.pipeline_mode<synchronous>, transform_indices = @transform_2, window_bounds = array<i64: 1, 9>}, {transform_indices = @transform_3, window_bounds = array<i64: 16, 1>}, {transform_indices = @transform_4, window_bounds = array<i64: 16, 9>}, {transform_indices = @transform_5, window_bounds = array<i64: 1, 8, 128>}, {transform_indices = @transform_6, window_bounds = array<i64: 1, 8, 128>}]} {
    %c0 = arith.constant 0 : index
    %c0_0 = arith.constant 0 : index
    %0 = vector.load %arg1[%c0, %c0_0] : memref<16x32xbf16, #tpu.memory_space<vmem>>, vector<16x32xbf16>
    %c0_1 = arith.constant 0 : index
    %c0_2 = arith.constant 0 : index
    %1 = vector.load %arg2[%c0_1, %c0_2] : memref<32x9xbf16, #tpu.memory_space<vmem>>, vector<32x9xbf16>
    %cst = arith.constant dense<0.000000e+00> : vector<16x9xf32>
    %2 = tpu.matmul %0, %1, %cst {dimension_numbers = #tpu.dot_dimension_numbers<[1], [0], [0], [1], [0, 0, 1, 1], [], []>} : vector<16x32xbf16>, vector<32x9xbf16>, vector<16x9xf32> -> vector<16x9xf32>
    %c0_3 = arith.constant 0 : index
    %c0_4 = arith.constant 0 : index
    %3 = vector.load %arg3[%c0_3, %c0_4] : memref<1x9xf32, #tpu.memory_space<vmem>>, vector<1x9xf32>
    %4 = vector.broadcast %3 : vector<1x9xf32> to vector<16x9xf32>
    %5 = arith.addf %2, %4 : vector<16x9xf32>
    %c0_5 = arith.constant 0 : index
    %c0_6 = arith.constant 0 : index
    %6 = vector.load %arg5[%c0_5, %c0_6] : memref<16x9xf32, #tpu.memory_space<vmem>>, vector<16x9xf32>
    tpu.vector_store %arg5[%c0_5, %c0_6], %5 {strides = array<i32>} : memref<16x9xf32, #tpu.memory_space<vmem>>, vector<16x9xf32>,
    %c0_7 = arith.constant 0 : index
    %c0_8 = arith.constant 0 : index
    %7 = vector.load %arg4[%c0_7, %c0_8] : memref<16x1xi32, #tpu.memory_space<vmem>>, vector<16x1xi32>
    %c-100_i32 = arith.constant -100 : i32
    %8 = vector.broadcast %c-100_i32 : i32 to vector<16x1xi32>
    %9 = arith.cmpi ne, %7, %8 : vector<16x1xi32>
    %cst_9 = arith.constant dense<0xFF800000> : vector<16xf32>
    %10 = vector.multi_reduction <maximumf>, %5, %cst_9 [1] : vector<16x9xf32> to vector<16xf32>
    %11 = vector.shape_cast %10 : vector<16xf32> to vector<16x1xf32>
    %12 = vector.broadcast %11 : vector<16x1xf32> to vector<16x9xf32>
    %13 = arith.subf %5, %12 : vector<16x9xf32>
    %14 = math.exp %13 : vector<16x9xf32>
    %cst_10 = arith.constant dense<0.000000e+00> : vector<16xf32>
    %15 = vector.multi_reduction <add>, %14, %cst_10 [1] : vector<16x9xf32> to vector<16xf32>
    %16 = vector.shape_cast %15 : vector<16xf32> to vector<16x1xf32>
    %17 = math.log %16 : vector<16x1xf32>
    %18 = arith.addf %11, %17 : vector<16x1xf32>
    %19 = tpu.iota {dimensions = array<i32: 1>} : vector<16x9xi32>
    %20 = vector.broadcast %7 : vector<16x1xi32> to vector<16x9xi32>
    %21 = arith.cmpi eq, %19, %20 : vector<16x9xi32>
    %cst_11 = arith.constant 0.000000e+00 : f32
    %22 = vector.broadcast %cst_11 : f32 to vector<16x9xf32>
    %23 = arith.select %21, %5, %22 : vector<16x9xi1>, vector<16x9xf32>
    %cst_12 = arith.constant dense<0.000000e+00> : vector<16xf32>
    %24 = vector.multi_reduction <add>, %23, %cst_12 [1] : vector<16x9xf32> to vector<16xf32>
    %25 = vector.shape_cast %24 : vector<16xf32> to vector<16x1xf32>
    %26 = arith.subf %18, %25 : vector<16x1xf32>
    %cst_13 = arith.constant 0.000000e+00 : f32
    %27 = vector.broadcast %cst_13 : f32 to vector<16x1xf32>
    %28 = arith.select %9, %26, %27 : vector<16x1xi1>, vector<16x1xf32>
    %29 = vector.shape_cast %28 : vector<16x1xf32> to vector<1x16x1xf32>
    %cst_14 = arith.constant dense<0.000000e+00> : vector<1xf32>
    %30 = vector.multi_reduction <add>, %29, %cst_14 [1, 2] : vector<1x16x1xf32> to vector<1xf32>
    %31 = vector.shape_cast %30 : vector<1xf32> to vector<1x1x1xf32>
    %32 = vector.extract %31[0, 0, 0] : f32 from vector<1x1x1xf32>
    %33 = vector.broadcast %32 : f32 to vector<1x8x128xf32>
    %c0_15 = arith.constant 0 : index
    %c0_16 = arith.constant 0 : index
    %c0_17 = arith.constant 0 : index
    %34 = vector.load %arg6[%c0_15, %c0_16, %c0_17] : memref<1x8x128xf32, #tpu.memory_space<vmem>>, vector<1x8x128xf32>
    tpu.vector_store %arg6[%c0_15, %c0_16, %c0_17], %33 {strides = array<i32>} : memref<1x8x128xf32, #tpu.memory_space<vmem>>, vector<1x8x128xf32>,
    %35 = arith.extui %9 : vector<16x1xi1> to vector<16x1xi32>
    %36 = arith.sitofp %35 : vector<16x1xi32> to vector<16x1xf32>
    %37 = vector.shape_cast %36 : vector<16x1xf32> to vector<1x16x1xf32>
    %cst_18 = arith.constant dense<0.000000e+00> : vector<1xf32>
    %38 = vector.multi_reduction <add>, %37, %cst_18 [1, 2] : vector<1x16x1xf32> to vector<1xf32>
    %39 = vector.shape_cast %38 : vector<1xf32> to vector<1x1x1xf32>
    %40 = vector.extract %39[0, 0, 0] : f32 from vector<1x1x1xf32>
    %41 = vector.broadcast %40 : f32 to vector<1x8x128xf32>
    %c0_19 = arith.constant 0 : index
    %c0_20 = arith.constant 0 : index
    %c0_21 = arith.constant 0 : index
    %42 = vector.load %arg7[%c0_19, %c0_20, %c0_21] : memref<1x8x128xf32, #tpu.memory_space<vmem>>, vector<1x8x128xf32>
    tpu.vector_store %arg7[%c0_19, %c0_20, %c0_21], %41 {strides = array<i32>} : memref<1x8x128xf32, #tpu.memory_space<vmem>>, vector<1x8x128xf32>,
    return
  }
  func.func @transform_0(%arg0: i32) -> (i32, i32) {
    %c0_i32 = arith.constant 0 : i32
    %c0_i32_0 = arith.constant 0 : i32
    return %arg0, %c0_i32 : i32, i32
  }
  func.func @transform_1(%arg0: i32) -> (i32, i32) {
    %c0_i32 = arith.constant 0 : i32
    %c0_i32_0 = arith.constant 0 : i32
    %c0_i32_1 = arith.constant 0 : i32
    return %c0_i32, %c0_i32_0 : i32, i32
  }
  func.func @transform_2(%arg0: i32) -> (i32, i32) {
    %c0_i32 = arith.constant 0 : i32
    %c0_i32_0 = arith.constant 0 : i32
    %c0_i32_1 = arith.constant 0 : i32
    return %c0_i32, %c0_i32_0 : i32, i32
  }
  func.func @transform_3(%arg0: i32) -> (i32, i32) {
    %c0_i32 = arith.constant 0 : i32
    %c0_i32_0 = arith.constant 0 : i32
    return %arg0, %c0_i32 : i32, i32
  }
  func.func @transform_4(%arg0: i32) -> (i32, i32) {
    %c0_i32 = arith.constant 0 : i32
    %c0_i32_0 = arith.constant 0 : i32
    return %arg0, %c0_i32 : i32, i32
  }
  func.func @transform_5(%arg0: i32) -> (i32, i32, i32) {
    %c0_i32 = arith.constant 0 : i32
    %c0_i32_0 = arith.constant 0 : i32
    %c0_i32_1 = arith.constant 0 : i32
    return %arg0, %c0_i32, %c0_i32_0 : i32, i32, i32
  }
  func.func @transform_6(%arg0: i32) -> (i32, i32, i32) {
    %c0_i32 = arith.constant 0 : i32
    %c0_i32_0 = arith.constant 0 : i32
    %c0_i32_1 = arith.constant 0 : i32
    return %arg0, %c0_i32, %c0_i32_0 : i32, i32, i32
  }
}

</mosaic_0001>

<bundles_post_ra>
// kernel: forward.1
= control target key start
LH: loop header
LB: loop body
LE: loop exit
PB: predicated region body
PF: predicated region fallthrough
CT: control target
= control target key end

     0   :  { %v272_v1 = vmov 0.0   ;;  %vm273_vm0 = vmmov 0   ;;  %s382_s0 = inlined_call_operand.vmem [shape: bf16[16,32], index: 0, kind: input, shape index: {}]   ;;  %s383_s1 = inlined_call_operand.vmem [shape: bf16[32,9], index: 1, kind: input, shape index: {}]   ;;  %s384_s2 = inlined_call_operand.vmem [shape: f32[1,9], index: 2, kind: input, shape index: {}]   ;;  %s385_s3 = inlined_call_operand.vmem [shape: s32[16,1], index: 3, kind: input, shape index: {}]   ;;  %s386_s4 = inlined_call_operand.hbm [shape: f32[16,9], index: 4, kind: output, shape index: {0}]   ;;  %s387_s5 = inlined_call_operand.vmem [shape: f32[1,8,128], index: 5, kind: output, shape index: {1}]   ;;  %s388_s6 = inlined_call_operand.vmem [shape: f32[1,8,128], index: 6, kind: output, shape index: {2}]  }
   0x1   :  { %v237_v0 = vld [vmem:[%s383_s1] sm:$0xff]   ;;  %217 = vmatprep.subr.bf16.mxu0 %v272_v1  ;;  %v238_v2 = vld [vmem:[%s383_s1 + $0x8] sm:$0xff]   ;;  %221 = vmatprep.mubr.msk.bf16.mxu0 %vm273_vm0, %v272_v1 }
   0x2   :  { %218 = vmatpush3.bf16.msra.mxu0 %v237_v0  ;;  %v325_v3 = vld [vmem:[%s385_s3] sm:$0xff] }
   0x3   :  { %219 = vmatprep.subr.bf16.mxu0 %v272_v1 }
   0x4   :  { %12 = vsyncpa [#allocation3], 0  ;;  %v274_v4 = vmov 0   ;;  %v239_v5 = vld [vmem:[%s382_s0] sm:$0xff]   ;;  %vm52_vm1 = vcmask 261120   ;;  %v334_v6 = vld [vmem:[%s385_s3 + $0x8] sm:$0xff]  ;;  %v128_v21 = vlaneseq }
   0x5   :  { %235 = vset.pattern.permute.xlu1 %v274_v4  ;;  %236 = vset.pattern.permute.xlu0 %v274_v4  ;;  %v207_v7 = vld [vmem:[%s384_s2] ss:$0 sm:$0xff]  ;;  %vm97_vm2 = vcmask 72704   ;;  %vm102_vm5 = vcmp.ne.s32.totalorder %v325_v3, 4294967196  ;;  %vm103_vm6 = vcmp.ne.s32.totalorder %v334_v6, 4294967196  ;;  %vm150_vm7 = vcmask 7168  }
   0x6   :  { %131 = vperm.xlu1 %235, %v325_v3   ;;  %220 = vmatpush3.bf16.msra.mxu0 %v238_v2  ;;  %v129_v24 = vand.u32 127, %v128_v21  ;;  %v212_v34 = vsel %vm102_vm5, 1.0, %v272_v1  ;;  %v213_v35 = vsel %vm103_vm6, 1.0, %v272_v1  ;;  %s275_s0 = smov [#allocation2]  }
   0x7   :  { %v169_v36 = vsel %vm150_vm7, %v212_v34, 0.0  ;;  %v170_v37 = vsel %vm150_vm7, %v213_v35, 0.0  ;;  %s188_s2 = sshll.u32 %s275_s0, 4  ;;  %s189_s2 = int_to_ptr.vmem [resolvable:$true] %s188_s2 }
   0x8   :  { %v171_v38 = vadd.f32 %v170_v37, %v169_v36  ;;  %s248_s3 = scalar_lea.vmem %s189_s2, 256  ;;  %p253_p1 = scmp.lt.s32.totalorder %s189_s2, %s189_s2 }
   0x9   :  { %222 = vmatmul.mubr.msk.bf16.vlgmr.msra.gmra.mrb[0].mxu0 %vm52_vm1, %v239_v5  ;;  %p249_p0 = scmp.ne.s32.totalorder %s189_s2, %s248_s3  ;;  %p254_p2 = scmp.lt.s32.totalorder %s248_s3, %s248_s3 }
   0xa   :  { %134 = vperm.xlu1 %235, %v334_v6  }
   0xb   :  { %p255_p3 = por %p254_p2, %p253_p1 }
   0xd   :  { %p256_p4 = pnand %p255_p3, %p249_p0 }
  0x85   :  { %v132_v23 = vpop.permute.xlu1 %131 }
  0x86   :  { %vm136_vm3 = vcmp.eq.s32.totalorder %v129_v24, %v132_v23 }
  0x89   :  { %v135_v26 = vpop.permute.xlu1 %134 }
  0x8a   :  { %vm137_vm4 = vcmp.eq.s32.totalorder %v129_v24, %v135_v26 }
  0xdc   :  { %v90_v8 = vpop.f32.mrb[0].mxu0 }
  0xdd   :  { %v91_v9 = vadd.f32 %v207_v7, %v90_v8  ;;  %v223_v10 = vpop.f32.mrb[1].mxu0 }
  0xde   :  { %v93_v11 = vpop.f32.mrb[2].mxu0 }
  0xdf   :  { %v94_v12 = vadd.f32 %v207_v7, %v93_v11  ;;  %v224_v13 = vpop.f32.mrb[3].mxu0  ;;  %v104_v14 = vsel %vm97_vm2, %v91_v9, -inf  ;;  %98 = vst.msk [vmem:[#allocation2] sm:$0xff] %vm97_vm2, %v91_v9  ;;  %v138_v28 = vsel %vm136_vm3, %v91_v9, 0.0 }
  0xe0   :  { %105 = vmax.xlane.f32.xlu0 %v104_v14  ;;  %v140_v30 = vsel %vm97_vm2, %v138_v28, 0.0 }
  0xe1   :  { %99 = vst.msk [vmem:[#allocation2 + $0x8] sm:$0xff] %vm97_vm2, %v94_v12  ;;  %v107_v15 = vsel %vm97_vm2, %v94_v12, -inf  ;;  %v139_v32 = vsel %vm137_vm4, %v94_v12, 0.0 }
  0xe2   :  { %v143_v33 = vsel %vm97_vm2, %v139_v32, 0.0 }
  0xe4   :  { %108 = vmax.xlane.f32.xlu0 %v107_v15 }
 0x16d   :  { %v106_v16 = vpop.xlane.xlu0 %105 }
 0x16e   :  { %v110_v17 = vsub.f32 %v91_v9, %v106_v16 }
 0x170   :  { %v112_v18 = vmul.f32 1.442695, %v110_v17 }
 0x171   :  { %v109_v19 = vpop.xlane.xlu0 %108 }
 0x172   :  { %240 = vpow2.f32 %v112_v18  ;;  %v111_v20 = vsub.f32 %v94_v12, %v109_v19 }
 0x174   :  { %v114_v22 = vmul.f32 1.442695, %v111_v20 }
 0x176   :  { %242 = vpow2.f32 %v114_v22 }
 0x17c   :  { %v241_v25 = vpop.eup %240 }
 0x17d   :  { %v116_v27 = vsel %vm97_vm2, %v241_v25, 0.0 }
 0x17e   :  { %117 = vadd.xlane.f32.xlu0 %v116_v27 }
 0x180   :  { %v243_v29 = vpop.eup %242 }
 0x181   :  { %v119_v31 = vsel %vm97_vm2, %v243_v29, 0.0 }
 0x182   :  { %141 = vadd.xlane.f32.xlu0 %v140_v30  ;;  %120 = vadd.xlane.f32.xlu1 %v119_v31 }
 0x186   :  { %144 = vadd.xlane.f32.xlu0 %v143_v33 }
 0x20b   :  { %v118_v39 = vpop.xlane.xlu0 %117 }
 0x20c   :  { %244 = vlog2.f32 %v118_v39 }
 0x20f   :  { %v121_v40 = vpop.xlane.xlu1 %120  ;;  %v142_v43 = vpop.xlane.xlu0 %141 }
 0x210   :  { %246 = vlog2.f32 %v121_v40 }
 0x213   :  { %v145_v49 = vpop.xlane.xlu0 %144 }
 0x216   :  { %v245_v41 = vpop.eup %244 }
 0x217   :  { %v123_v42 = vmul.f32 0.6931472, %v245_v41 }
 0x219   :  { %v126_v44 = vadd.f32 %v123_v42, %v106_v16 }
 0x21a   :  { %v247_v45 = vpop.eup %246 }
 0x21b   :  { %v125_v46 = vmul.f32 0.6931472, %v247_v45  ;;  %v146_v47 = vsub.f32 %v126_v44, %v142_v43 }
 0x21d   :  { %v127_v48 = vadd.f32 %v125_v46, %v109_v19  ;;  %v148_v50 = vsel %vm102_vm5, %v146_v47, 0.0 }
 0x21e   :  { %v151_v53 = vsel %vm150_vm7, %v148_v50, 0.0 }
 0x21f   :  { %v147_v51 = vsub.f32 %v127_v48, %v145_v49 }
 0x221   :  { %v149_v52 = vsel %vm103_vm6, %v147_v51, 0.0 }
 0x222   :  { %v152_v54 = vsel %vm150_vm7, %v149_v52, 0.0 }
 0x223   :  { %v153_v55 = vadd.f32 %v152_v54, %v151_v53 }
 0x225   :  { %154 = vadd.xlane.f32.xlu0 %v153_v55 }
 0x229   :  { %172 = vadd.xlane.f32.xlu0 %v171_v38 }
 0x22a   :  { %259 = shalt.err (!%p256_p4)
}
 0x22b   :  { %s260_s10 = scalar_lea.hbm %s386_s4, 256 }
 0x22c   :  { %p261_p5 = scmp.ne.s32.totalorder %s386_s4, %s260_s10  ;;  %p264_p6 = scmp.lt.u32.totalorder %s260_s10, %s386_s4 }
 0x22e   :  { %p266_p7 = pnand %p264_p6, %p261_p5 }
 0x230   :  { %269 = shalt.err (!%p266_p7)
}
 0x231   :  { %s276_s15 = smov 128   ;;  %s277_s16 = smov 8  }
 0x232   :  { %194 = dma.vmem_to_hbm [thread:$0]  %s189_s2, 256, %s386_s4, [#allocation3], %s276_s15, %s276_s15, %s277_s16  }
 0x2b2   :  { %v155_v56 = vpop.xlane.xlu0 %154 }
 0x2b3   :  { %v156_v57 = vrot.slane %v155_v56, 4 }
 0x2b5   :  { %v157_v58 = vadd.f32 %v156_v57, %v155_v56 }
 0x2b6   :  { %v173_v59 = vpop.xlane.xlu0 %172 }
 0x2b7   :  { %v158_v60 = vrot.slane %v157_v58, 2  ;;  %v174_v61 = vrot.slane %v173_v59, 4 }
 0x2b9   :  { %v175_v62 = vadd.f32 %v174_v61, %v173_v59  ;;  %v159_v63 = vadd.f32 %v158_v60, %v157_v58 }
 0x2bb   :  { %v176_v0 = vrot.slane %v175_v62, 2  ;;  %v160_v1 = vrot.slane %v159_v63, 1 }
 0x2bd   :  { %v177_v2 = vadd.f32 %v176_v0, %v175_v62  ;;  %v161_v3 = vadd.f32 %v160_v1, %v159_v63 }
 0x2bf   :  { %225 = vpush %v161_v3  ;;  %v178_v4 = vrot.slane %v177_v2, 1 }
 0x2c1   :  { %v179_v5 = vadd.f32 %v178_v4, %v177_v2 }
 0x2c3   :  { %227 = vpush %v179_v5 }
 0x2f0   :  { %s226_s19 = spop %225 }
 0x2f1   :  { %v163_v6 = vstv %s226_s19 }
 0x2f2   :  { %164 = vst [vmem:[%s387_s5] sm:$0xff] %v163_v6 }
 0x2f4   :  { %s228_s21 = spop %227 }
 0x2f5   :  { %v181_v7 = vstv %s228_s21 }
 0x2f6   :  { %182 = vst [vmem:[%s388_s6] sm:$0xff] %v181_v7 }
 0x2f7   :  { %270 = dma.done.wait [#allocation3], 256  }
 0x2f8   :  { %271 = vsyncadd [#allocation3], 4294967040 }
 0x2f9   :  { %206 = vsyncpa [#allocation3], 1 }

</bundles_post_ra>
